<compile_context>
chip_gen: v7x
topology: tpu7x:2x2x1
jax: 0.10.0
libtpu: 0.0.40
codegen_flags: <defaults>
</compile_context>

<pallas_src>
import numpy as np
import jax
import jax.numpy as jnp
from jax.experimental import pallas as pl
from jax.experimental.pallas import tpu as pltpu


def _banded_weights(w_oihw, W, pad, dtype):
    """Pack (Co, Ci, KH, KW) conv weights into KH banded matmul operands.

    Returns M with shape (KH, W*Ci, W*Co) such that, for an H-padded (not W-padded)
    slab x2d[hp, w*Ci + ci]:
        conv_out[h, w*Co + co] = sum_kh (x2d[h + kh, :] @ M[kh])[w*Co + co]
    for stride=1, 'same' (pad = KW//2) padding.  Out-of-range W taps are simply
    dropped (== zero padding).  Built with numpy on the host -> free.
    """
    w = np.asarray(w_oihw, np.float32)                 # (Co, Ci, KH, KW)
    Co, Ci, KH, KW = w.shape
    w_hwio = np.transpose(w, (2, 3, 1, 0))             # (KH, KW, Ci, Co)
    M = np.zeros((KH, W * Ci, W * Co), np.float32)
    for kh in range(KH):
        for kw in range(KW):
            for wo in range(W):
                wi = wo + kw - pad
                if 0 <= wi < W:
                    M[kh, wi * Ci:(wi + 1) * Ci, wo * Co:(wo + 1) * Co] = w_hwio[kh, kw]
    return jnp.asarray(M, dtype)


def _pick_batch_tile(B, H, target_rows=128):
    """Batch-tile size: target matmul M = Bt*H ~= 128 rows, keep >= 2 grid steps."""
    bt = max(1, min(B, max(1, target_rows // H)))
    while B % bt:
        bt -= 1
    while bt > 1 and (B // bt) < 2:        # leave work for both TCs on v7x
        bt = bt // 2
        while B % bt:
            bt -= 1
    return bt


def basic_conv_block_forward(x_nchw, params, *, kernel_size=3,
                             operand_dtype=jnp.bfloat16):
    """x_nchw: (B, Cin, H, W) float32 -> (B, Cout, H, W) float32."""
    assert kernel_size % 2 == 1
    K = kernel_size
    pad = K // 2                                        # stride=1, 'same' padding
    w1, b1 = params["w1"], params["b1"]                 # (Cout, Cin, K, K), (Cout,)
    w2, b2 = params["w2"], params["b2"]                 # (Cout, Cout, K, K), (Cout,)
    B, Cin, H, W = x_nchw.shape
    Cout = w1.shape[0]
    Hp = H + 2 * pad
    WCi, WCo = W * Cin, W * Cout
    Bt = _pick_batch_tile(B, H)
    MB = Bt * H                                         # matmul M rows per grid step

    # ---------------- host-side layout plumbing (free) ----------------
    x_nhwc = jnp.transpose(x_nchw, (0, 2, 3, 1))                      # (B,H,W,Cin)
    x_p = jnp.pad(x_nhwc, ((0, 0), (pad, pad), (0, 0), (0, 0)))       # H-pad only
    x2d = x_p.reshape(B, Hp, WCi).astype(operand_dtype)               # (B,Hp,W*Cin)

    m1 = _banded_weights(w1, W, pad, operand_dtype)     # (K, W*Cin,  W*Cout)
    m2 = _banded_weights(w2, W, pad, operand_dtype)     # (K, W*Cout, W*Cout)
    b1t = jnp.tile(b1.astype(jnp.float32), (W,)).reshape(1, WCo)      # per-lane bias
    b2t = jnp.tile(b2.astype(jnp.float32), (W,)).reshape(1, WCo)

    def kernel(x_ref, m1_ref, b1_ref, m2_ref, b2_ref, out_ref, y1p_ref):
        # Zero only the H-halo rows of the intermediate slab (2*pad rows / image,
        # lane-dense, width 128).  Done every step: multi-TC chips give each core
        # its own scratch, so a program_id==0-only init would miss the other core.
        zhalo = jnp.zeros((Bt, pad, WCo), y1p_ref.dtype)
        y1p_ref[:, pl.ds(0, pad), :] = zhalo
        y1p_ref[:, pl.ds(H + pad, pad), :] = zhalo

        def banded(lhs_fn, m_ref):                      # sum_kh lhs(kh) @ m[kh]
            acc = jnp.dot(lhs_fn(0), m_ref[0], preferred_element_type=jnp.float32)
            for kh in range(1, K):                      # static, fully unrolled
                acc += jnp.dot(lhs_fn(kh), m_ref[kh],
                               preferred_element_type=jnp.float32)
            return acc

        # ---- conv1 + bias + ReLU:  (Bt*H, W*Cin) @ (W*Cin, W*Cout), K matmuls ----
        acc1 = banded(lambda kh: x_ref[:, pl.ds(kh, H), :].reshape(MB, WCi), m1_ref)
        y1 = jnp.maximum(acc1 + b1_ref[...], 0.0)       # f32 (Bt*H, W*Cout)

        # ---- intermediate slab store: lane offset 0, width 128 (lane-dense) ----
        y1p_ref[:, pl.ds(pad, H), :] = y1.reshape(Bt, H, WCo).astype(y1p_ref.dtype)

        # ---- conv2 + bias: (Bt*H, W*Cout) @ (W*Cout, W*Cout), K matmuls ----
        acc2 = banded(lambda kh: y1p_ref[:, pl.ds(kh, H), :].reshape(MB, WCo), m2_ref)
        out_ref[...] = (acc2 + b2_ref[...]).reshape(Bt, H, WCo).astype(out_ref.dtype)

    out2d = pl.pallas_call(
        kernel,
        out_shape=jax.ShapeDtypeStruct((B, H, WCo), jnp.float32),
        grid_spec=pltpu.PrefetchScalarGridSpec(
            num_scalar_prefetch=0,
            grid=(B // Bt,),
            in_specs=[
                pl.BlockSpec((Bt, Hp, WCi), lambda b: (b, 0, 0)),
                pl.BlockSpec(m1.shape, lambda b: (0, 0, 0)),     # revisited block
                pl.BlockSpec(b1t.shape, lambda b: (0, 0)),
                pl.BlockSpec(m2.shape, lambda b: (0, 0, 0)),     # revisited block
                pl.BlockSpec(b2t.shape, lambda b: (0, 0)),
            ],
            out_specs=pl.BlockSpec((Bt, H, WCo), lambda b: (b, 0, 0)),
            scratch_shapes=[pltpu.VMEM((Bt, Hp, WCo), operand_dtype)],
        ),
        compiler_params=pltpu.CompilerParams(
            dimension_semantics=("parallel",)),         # default VMEM limit is plenty
    )(x2d, m1, b1t, m2, b2t)

    # (B, H, W*Cout) -> (B, Cout, H, W)  (PyTorch NCHW)
    return jnp.transpose(out2d.reshape(B, H, W, Cout), (0, 3, 1, 2))


def init_params(key, in_channel, out_channel, kernel_size):
    """PyTorch Conv2d-style init: U(-1/sqrt(fan_in), 1/sqrt(fan_in))."""
    k1, k2 = jax.random.split(key)

    def conv_init(kk, co, ci):
        fan_in = ci * kernel_size * kernel_size
        bound = 1.0 / np.sqrt(fan_in)
        kw_, kb_ = jax.random.split(kk)
        w = jax.random.uniform(kw_, (co, ci, kernel_size, kernel_size),
                               jnp.float32, -bound, bound)
        b = jax.random.uniform(kb_, (co,), jnp.float32, -bound, bound)
        return w, b

    w1, b1 = conv_init(k1, out_channel, in_channel)
    w2, b2 = conv_init(k2, out_channel, out_channel)
    return dict(w1=w1, b1=b1, w2=w2, b2=b2)


def reference_forward(x_nchw, params, *, kernel_size=3, operand_dtype=jnp.float32):
    """Pure-JAX reference of Conv2d -> ReLU -> Conv2d (stride=1, 'same' padding).

    With operand_dtype=bfloat16 this mirrors the kernel's dataflow exactly
    (bf16 MXU operands, f32 accumulation, f32 bias/ReLU), so the only remaining
    difference vs the Pallas kernel is accumulation order.
    """
    pad = kernel_size // 2
    prec = jax.lax.Precision.HIGHEST
    q = lambda a: a.astype(operand_dtype).astype(jnp.float32)

    def conv(x, w, b):
        dn = jax.lax.conv_dimension_numbers(x.shape, w.shape,
                                            ("NCHW", "OIHW", "NCHW"))
        y = jax.lax.conv_general_dilated(
            q(x), q(w), window_strides=(1, 1), padding=[(pad, pad), (pad, pad)],
            dimension_numbers=dn, precision=prec)
        return y + b[None, :, None, None].astype(jnp.float32)

    y = jnp.maximum(conv(x_nchw, params["w1"], params["b1"]), 0.0)
    return conv(y, params["w2"], params["b2"])


if __name__ == "__main__":
    # Small demo shapes; B=8 exercises the batch-tiled grid (Bt=4 -> 2 grid steps).
    B, Cin, Cout, H, W, K = 8, 4, 8, 16, 16, 3

    key = jax.random.PRNGKey(0)
    kx, kp = jax.random.split(key)
    x = jax.random.normal(kx, (B, Cin, H, W), jnp.float32)
    params = init_params(kp, Cin, Cout, K)

    out = basic_conv_block_forward(x, params, kernel_size=K)
    out = jax.block_until_ready(out)
    assert out.shape == (B, Cout, H, W)

    # Exactness check against a reference with identical bf16 operand quantization
    # (remaining differences are accumulation-order only).
    ref_q = reference_forward(x, params, kernel_size=K, operand_dtype=jnp.bfloat16)
    err_q = float(jnp.max(jnp.abs(out - ref_q)))
    assert err_q < 2e-3, f"max abs err vs quantization-matched ref: {err_q}"

    # Sanity bound against the full-f32 module semantics (bf16 quantization noise).
    ref_f32 = reference_forward(x, params, kernel_size=K)
    err_f32 = float(jnp.max(jnp.abs(out - ref_f32)))
    assert err_f32 < 1e-1, f"max abs err vs f32 ref: {err_f32}"

    print("KERNEL_OK")
</pallas_src>

<mosaic_0001>
module attributes {stable_mosaic.version = 11 : i64} {
  func.func @kernel(%arg0: i32, %arg1: memref<4x18x64xbf16, #tpu.memory_space<vmem>>, %arg2: memref<3x64x128xbf16, #tpu.memory_space<vmem>>, %arg3: memref<1x128xf32, #tpu.memory_space<vmem>>, %arg4: memref<3x128x128xbf16, #tpu.memory_space<vmem>>, %arg5: memref<1x128xf32, #tpu.memory_space<vmem>>, %arg6: memref<4x16x128xf32, #tpu.memory_space<vmem>>, %arg7: memref<4x18x128xbf16, #tpu.memory_space<vmem>>) attributes {dimension_semantics = [#tpu.dimension_semantics<parallel>], iteration_bounds = array<i64: 2>, scalar_prefetch = 0 : i64, scratch_operands = 1 : i64, tpu.core_type = #tpu.core_type<tc>, window_params = [{transform_indices = @transform_0, window_bounds = array<i64: 4, 18, 64>}, {pipeline_mode = #tpu.pipeline_mode<synchronous>, transform_indices = @transform_1, window_bounds = array<i64: 3, 64, 128>}, {pipeline_mode = #tpu.pipeline_mode<synchronous>, transform_indices = @transform_2, window_bounds = array<i64: 1, 128>}, {pipeline_mode = #tpu.pipeline_mode<synchronous>, transform_indices = @transform_3, window_bounds = array<i64: 3, 128, 128>}, {pipeline_mode = #tpu.pipeline_mode<synchronous>, transform_indices = @transform_4, window_bounds = array<i64: 1, 128>}, {transform_indices = @transform_5, window_bounds = array<i64: 4, 16, 128>}]} {
    %cst = arith.constant 0.000000e+00 : bf16
    %0 = vector.broadcast %cst : bf16 to vector<4x1x128xbf16>
    %c0 = arith.constant 0 : index
    %c0_0 = arith.constant 0 : index
    %c0_1 = arith.constant 0 : index
    %1 = vector.load %arg7[%c0, %c0_0, %c0_1] : memref<4x18x128xbf16, #tpu.memory_space<vmem>>, vector<4x1x128xbf16>
    tpu.vector_store %arg7[%c0, %c0_0, %c0_1], %0 {strides = array<i32>} : memref<4x18x128xbf16, #tpu.memory_space<vmem>>, vector<4x1x128xbf16>,
    %c0_2 = arith.constant 0 : index
    %c17 = arith.constant 17 : index
    %c0_3 = arith.constant 0 : index
    %2 = vector.load %arg7[%c0_2, %c17, %c0_3] : memref<4x18x128xbf16, #tpu.memory_space<vmem>>, vector<4x1x128xbf16>
    tpu.vector_store %arg7[%c0_2, %c17, %c0_3], %0 {strides = array<i32>} : memref<4x18x128xbf16, #tpu.memory_space<vmem>>, vector<4x1x128xbf16>,
    %c0_4 = arith.constant 0 : index
    %c0_5 = arith.constant 0 : index
    %c0_6 = arith.constant 0 : index
    %3 = vector.load %arg1[%c0_4, %c0_5, %c0_6] : memref<4x18x64xbf16, #tpu.memory_space<vmem>>, vector<4x16x64xbf16>
    %4 = vector.shape_cast %3 : vector<4x16x64xbf16> to vector<64x64xbf16>
    %c0_7 = arith.constant 0 : index
    %c0_8 = arith.constant 0 : index
    %c0_9 = arith.constant 0 : index
    %5 = vector.load %arg2[%c0_7, %c0_8, %c0_9] : memref<3x64x128xbf16, #tpu.memory_space<vmem>>, vector<1x64x128xbf16>
    %6 = vector.shape_cast %5 : vector<1x64x128xbf16> to vector<64x128xbf16>
    %cst_10 = arith.constant dense<0.000000e+00> : vector<64x128xf32>
    %7 = tpu.matmul %4, %6, %cst_10 {dimension_numbers = #tpu.dot_dimension_numbers<[1], [0], [0], [1], [0, 0, 1, 1], [], []>} : vector<64x64xbf16>, vector<64x128xbf16>, vector<64x128xf32> -> vector<64x128xf32>
    %c0_11 = arith.constant 0 : index
    %c1 = arith.constant 1 : index
    %c0_12 = arith.constant 0 : index
    %8 = vector.load %arg1[%c0_11, %c1, %c0_12] : memref<4x18x64xbf16, #tpu.memory_space<vmem>>, vector<4x16x64xbf16>
    %9 = vector.shape_cast %8 : vector<4x16x64xbf16> to vector<64x64xbf16>
    %c1_13 = arith.constant 1 : index
    %c0_14 = arith.constant 0 : index
    %c0_15 = arith.constant 0 : index
    %10 = vector.load %arg2[%c1_13, %c0_14, %c0_15] : memref<3x64x128xbf16, #tpu.memory_space<vmem>>, vector<1x64x128xbf16>
    %11 = vector.shape_cast %10 : vector<1x64x128xbf16> to vector<64x128xbf16>
    %cst_16 = arith.constant dense<0.000000e+00> : vector<64x128xf32>
    %12 = tpu.matmul %9, %11, %cst_16 {dimension_numbers = #tpu.dot_dimension_numbers<[1], [0], [0], [1], [0, 0, 1, 1], [], []>} : vector<64x64xbf16>, vector<64x128xbf16>, vector<64x128xf32> -> vector<64x128xf32>
    %13 = arith.addf %7, %12 : vector<64x128xf32>
    %c0_17 = arith.constant 0 : index
    %c2 = arith.constant 2 : index
    %c0_18 = arith.constant 0 : index
    %14 = vector.load %arg1[%c0_17, %c2, %c0_18] : memref<4x18x64xbf16, #tpu.memory_space<vmem>>, vector<4x16x64xbf16>
    %15 = vector.shape_cast %14 : vector<4x16x64xbf16> to vector<64x64xbf16>
    %c2_19 = arith.constant 2 : index
    %c0_20 = arith.constant 0 : index
    %c0_21 = arith.constant 0 : index
    %16 = vector.load %arg2[%c2_19, %c0_20, %c0_21] : memref<3x64x128xbf16, #tpu.memory_space<vmem>>, vector<1x64x128xbf16>
    %17 = vector.shape_cast %16 : vector<1x64x128xbf16> to vector<64x128xbf16>
    %cst_22 = arith.constant dense<0.000000e+00> : vector<64x128xf32>
    %18 = tpu.matmul %15, %17, %cst_22 {dimension_numbers = #tpu.dot_dimension_numbers<[1], [0], [0], [1], [0, 0, 1, 1], [], []>} : vector<64x64xbf16>, vector<64x128xbf16>, vector<64x128xf32> -> vector<64x128xf32>
    %19 = arith.addf %13, %18 : vector<64x128xf32>
    %c0_23 = arith.constant 0 : index
    %c0_24 = arith.constant 0 : index
    %20 = vector.load %arg3[%c0_23, %c0_24] : memref<1x128xf32, #tpu.memory_space<vmem>>, vector<1x128xf32>
    %21 = vector.broadcast %20 : vector<1x128xf32> to vector<64x128xf32>
    %22 = arith.addf %19, %21 : vector<64x128xf32>
    %cst_25 = arith.constant 0.000000e+00 : f32
    %23 = vector.broadcast %cst_25 : f32 to vector<64x128xf32>
    %24 = arith.maximumf %22, %23 : vector<64x128xf32>
    %25 = vector.shape_cast %24 : vector<64x128xf32> to vector<4x16x128xf32>
    %26 = arith.truncf %25 : vector<4x16x128xf32> to vector<4x16x128xbf16>
    %c0_26 = arith.constant 0 : index
    %c1_27 = arith.constant 1 : index
    %c0_28 = arith.constant 0 : index
    %27 = vector.load %arg7[%c0_26, %c1_27, %c0_28] : memref<4x18x128xbf16, #tpu.memory_space<vmem>>, vector<4x16x128xbf16>
    tpu.vector_store %arg7[%c0_26, %c1_27, %c0_28], %26 {strides = array<i32>} : memref<4x18x128xbf16, #tpu.memory_space<vmem>>, vector<4x16x128xbf16>,
    %c0_29 = arith.constant 0 : index
    %c0_30 = arith.constant 0 : index
    %c0_31 = arith.constant 0 : index
    %28 = vector.load %arg7[%c0_29, %c0_30, %c0_31] : memref<4x18x128xbf16, #tpu.memory_space<vmem>>, vector<4x16x128xbf16>
    %29 = vector.shape_cast %28 : vector<4x16x128xbf16> to vector<64x128xbf16>
    %c0_32 = arith.constant 0 : index
    %c0_33 = arith.constant 0 : index
    %c0_34 = arith.constant 0 : index
    %30 = vector.load %arg4[%c0_32, %c0_33, %c0_34] : memref<3x128x128xbf16, #tpu.memory_space<vmem>>, vector<1x128x128xbf16>
    %31 = vector.shape_cast %30 : vector<1x128x128xbf16> to vector<128x128xbf16>
    %cst_35 = arith.constant dense<0.000000e+00> : vector<64x128xf32>
    %32 = tpu.matmul %29, %31, %cst_35 {dimension_numbers = #tpu.dot_dimension_numbers<[1], [0], [0], [1], [0, 0, 1, 1], [], []>} : vector<64x128xbf16>, vector<128x128xbf16>, vector<64x128xf32> -> vector<64x128xf32>
    %c0_36 = arith.constant 0 : index
    %c1_37 = arith.constant 1 : index
    %c0_38 = arith.constant 0 : index
    %33 = vector.load %arg7[%c0_36, %c1_37, %c0_38] : memref<4x18x128xbf16, #tpu.memory_space<vmem>>, vector<4x16x128xbf16>
    %34 = vector.shape_cast %33 : vector<4x16x128xbf16> to vector<64x128xbf16>
    %c1_39 = arith.constant 1 : index
    %c0_40 = arith.constant 0 : index
    %c0_41 = arith.constant 0 : index
    %35 = vector.load %arg4[%c1_39, %c0_40, %c0_41] : memref<3x128x128xbf16, #tpu.memory_space<vmem>>, vector<1x128x128xbf16>
    %36 = vector.shape_cast %35 : vector<1x128x128xbf16> to vector<128x128xbf16>
    %cst_42 = arith.constant dense<0.000000e+00> : vector<64x128xf32>
    %37 = tpu.matmul %34, %36, %cst_42 {dimension_numbers = #tpu.dot_dimension_numbers<[1], [0], [0], [1], [0, 0, 1, 1], [], []>} : vector<64x128xbf16>, vector<128x128xbf16>, vector<64x128xf32> -> vector<64x128xf32>
    %38 = arith.addf %32, %37 : vector<64x128xf32>
    %c0_43 = arith.constant 0 : index
    %c2_44 = arith.constant 2 : index
    %c0_45 = arith.constant 0 : index
    %39 = vector.load %arg7[%c0_43, %c2_44, %c0_45] : memref<4x18x128xbf16, #tpu.memory_space<vmem>>, vector<4x16x128xbf16>
    %40 = vector.shape_cast %39 : vector<4x16x128xbf16> to vector<64x128xbf16>
    %c2_46 = arith.constant 2 : index
    %c0_47 = arith.constant 0 : index
    %c0_48 = arith.constant 0 : index
    %41 = vector.load %arg4[%c2_46, %c0_47, %c0_48] : memref<3x128x128xbf16, #tpu.memory_space<vmem>>, vector<1x128x128xbf16>
    %42 = vector.shape_cast %41 : vector<1x128x128xbf16> to vector<128x128xbf16>
    %cst_49 = arith.constant dense<0.000000e+00> : vector<64x128xf32>
    %43 = tpu.matmul %40, %42, %cst_49 {dimension_numbers = #tpu.dot_dimension_numbers<[1], [0], [0], [1], [0, 0, 1, 1], [], []>} : vector<64x128xbf16>, vector<128x128xbf16>, vector<64x128xf32> -> vector<64x128xf32>
    %44 = arith.addf %38, %43 : vector<64x128xf32>
    %c0_50 = arith.constant 0 : index
    %c0_51 = arith.constant 0 : index
    %45 = vector.load %arg5[%c0_50, %c0_51] : memref<1x128xf32, #tpu.memory_space<vmem>>, vector<1x128xf32>
    %46 = vector.broadcast %45 : vector<1x128xf32> to vector<64x128xf32>
    %47 = arith.addf %44, %46 : vector<64x128xf32>
    %48 = vector.shape_cast %47 : vector<64x128xf32> to vector<4x16x128xf32>
    %c0_52 = arith.constant 0 : index
    %c0_53 = arith.constant 0 : index
    %c0_54 = arith.constant 0 : index
    %49 = vector.load %arg6[%c0_52, %c0_53, %c0_54] : memref<4x16x128xf32, #tpu.memory_space<vmem>>, vector<4x16x128xf32>
    tpu.vector_store %arg6[%c0_52, %c0_53, %c0_54], %48 {strides = array<i32>} : memref<4x16x128xf32, #tpu.memory_space<vmem>>, vector<4x16x128xf32>,
    return
  }
  func.func @transform_0(%arg0: i32) -> (i32, i32, i32) {
    %c0_i32 = arith.constant 0 : i32
    %c0_i32_0 = arith.constant 0 : i32
    %c0_i32_1 = arith.constant 0 : i32
    return %arg0, %c0_i32, %c0_i32_0 : i32, i32, i32
  }
  func.func @transform_1(%arg0: i32) -> (i32, i32, i32) {
    %c0_i32 = arith.constant 0 : i32
    %c0_i32_0 = arith.constant 0 : i32
    %c0_i32_1 = arith.constant 0 : i32
    %c0_i32_2 = arith.constant 0 : i32
    return %c0_i32, %c0_i32_0, %c0_i32_1 : i32, i32, i32
  }
  func.func @transform_2(%arg0: i32) -> (i32, i32) {
    %c0_i32 = arith.constant 0 : i32
    %c0_i32_0 = arith.constant 0 : i32
    %c0_i32_1 = arith.constant 0 : i32
    return %c0_i32, %c0_i32_0 : i32, i32
  }
  func.func @transform_3(%arg0: i32) -> (i32, i32, i32) {
    %c0_i32 = arith.constant 0 : i32
    %c0_i32_0 = arith.constant 0 : i32
    %c0_i32_1 = arith.constant 0 : i32
    %c0_i32_2 = arith.constant 0 : i32
    return %c0_i32, %c0_i32_0, %c0_i32_1 : i32, i32, i32
  }
  func.func @transform_4(%arg0: i32) -> (i32, i32) {
    %c0_i32 = arith.constant 0 : i32
    %c0_i32_0 = arith.constant 0 : i32
    %c0_i32_1 = arith.constant 0 : i32
    return %c0_i32, %c0_i32_0 : i32, i32
  }
  func.func @transform_5(%arg0: i32) -> (i32, i32, i32) {
    %c0_i32 = arith.constant 0 : i32
    %c0_i32_0 = arith.constant 0 : i32
    %c0_i32_1 = arith.constant 0 : i32
    return %arg0, %c0_i32, %c0_i32_0 : i32, i32, i32
  }
}

</mosaic_0001>

<bundles_post_ra>
// kernel: tpu_custom_call.1
= control target key start
LH: loop header
LB: loop body
LE: loop exit
PB: predicated region body
PF: predicated region fallthrough
CT: control target
= control target key end

     0   :  { %10 = vsyncpa [#allocation4], 0  ;;  %s2726_s0 = inlined_call_operand.vmem [shape: bf16[8,18,64], index: 0, kind: input, shape index: {}]   ;;  %s2727_s1 = inlined_call_operand.vmem [shape: bf16[3,64,128], index: 1, kind: input, shape index: {}]   ;;  %s2728_s2 = inlined_call_operand.vmem [shape: f32[1,128], index: 2, kind: input, shape index: {}]   ;;  %s2729_s3 = inlined_call_operand.hbm [shape: bf16[3,128,128], index: 3, kind: input, shape index: {}]   ;;  %s2730_s4 = inlined_call_operand.vmem [shape: f32[1,128], index: 4, kind: input, shape index: {}]   ;;  %s2731_s5 = inlined_call_operand.hbm [shape: f32[8,16,128], index: 5, kind: output, shape index: {}]  }
   0x1   :  { %11 = vsyncpa [#allocation5], 0 }
   0x2   :  { %13 = vsyncpa [#allocation5 + $0x1], 0  ;;  %s2256_s18 = smov 0   ;;  %s2258_s19 = smov 0  }
   0x3   :  { %s2260_s20 = smov 0   ;;  %s2262_s21 = smov 0  }
   0x4 LB: > { %s2277_s22 = sadd.s32 4294967295, %s2218_s21   ;;  %s1682_s23 = sadd.s32 4294967294, %s2218_s21   ;;  %s2218_s21 = sphi %s2262_s21, %s2759_s21   ;;  %s2214_s20 = sphi %s2260_s20, %s2758_s20   ;;  %s2210_s19 = sphi %s2258_s19, %s2757_s19   ;;  %s2206_s18 = sphi %s2256_s18, %s2756_s18  }
   0x5   : > { %s2281_s24 = sadd.s32 1, %s2218_s21   ;;  %s136_s25 = sadd.s32 1, %s2214_s20 }
   0x6   : > { %s133_s26 = ssub.s32 %s2218_s21, %s2281_s24  ;;  %p146_p0 = scmp.ne.s32.totalorder %s2214_s20, %s2210_s19 }
   0x7   : > { %p134_p1 = scmp.eq.s32.totalorder %s133_s26, 0  ;;  %p147_p2 = scmp.eq.s32.totalorder %s2277_s22, 1 }
   0x8   : > { %p152_p3 = scmp.ne.s32.totalorder %s2210_s19, %s2206_s18  ;;  %p153_p4 = scmp.eq.s32.totalorder %s1682_s23, 1 }
   0x9   : > { %s2292_s27 = scalar_select %p134_p1, %s2214_s20, %s136_s25  }
   0xa   : > { %p2294_p5 = por %p147_p2, %p146_p0  ;;  %p2298_p6 = por %p153_p4, %p152_p3 }
   0xb   : > { %p1683_p7 = scmp.ge.s32.totalorder %s2218_s21, 1  ;;  %p160_p8 = scmp.lt.s32.totalorder %s2218_s21, 3 }
   0xc   : > { %s2735_s28 = scalar_select %p2294_p5, 1, 0 }
   0xd   : > { %s2736_s29 = scalar_select %p2298_p6, 1, 0 }
   0xe   : > { %p2732_p9 = scmp.eq.s32.totalorder %s2277_s22, 0  ;;  %p2305_p10 = pnand %p1683_p7, %p160_p8 }
   0xf   : > { %s2220_s6 = smov [#allocation3]   ;;  %s2124_s11 = scalar_lea.hbm %s2729_s3, 3072 }
  0x10   : > { %s2737_s30 = scalar_select %p2305_p10, 1, 0 }
  0x11   : > { %s178_s7 = sshll.u32 %s2220_s6, 4  ;;  %p2032_p11 = pneg %p2305_p10  ;;  %s179_s7 = int_to_ptr.vmem [resolvable:$true] %s178_s7 }
  0x12   : > { %p2125_p13 = scmp.ne.s32.totalorder %s2729_s3, %s2124_s11  ;;  %p2131_p3 = scmp.lt.u32.totalorder %s2124_s11, %s2729_s3 }
  0x13   : > { %p2313_p12 = pnand %p2732_p9, %p2032_p11 }
  0x15   : > { %p2126_p0 = pneg %p2313_p12 }
  0x17   : > { %p2127_p1 = pnand %p2126_p0, %p2125_p13 }
  0x19   : > { %p2128_p2 = pneg %p2127_p1 }
  0x1b   : > { %p2133_p4 = pnand %p2131_p3, %p2128_p2 }
  0x1d   : > { %2136 = shalt.err (!%p2133_p4)
}
  0x1e   : > { %s2137_s16 = scalar_lea.vmem %s179_s7, 3072  ;;  %p2145_p9 = scmp.lt.s32.totalorder %s179_s7, %s179_s7 }
  0x1f   : > { %p2138_p7 = scmp.ne.s32.totalorder %s179_s7, %s2137_s16  ;;  %p2146_p6 = scmp.lt.s32.totalorder %s2137_s16, %s2137_s16 }
  0x21   : > { %p2140_p8 = pnand %p2138_p7, %p2126_p0  ;;  %p2147_p5 = por %p2146_p6, %p2145_p9 }
  0x23   : > { %p2141_p11 = pneg %p2140_p8 }
  0x25   : > { %p2148_p10 = pnand %p2147_p5, %p2141_p11 }
  0x27   : > { %2151 = shalt.err (!%p2148_p10)
}
  0x28   : > { %s2221_s17 = smov 64   ;;  %s2222_s23 = smov 4  }
  0x29   : > { %2035 = dma.hbm_to_vmem [thread:$0]  (!%p2313_p12), %s2729_s3, 3072, %s179_s7, [#allocation4], %s2221_s17, %s2221_s17, %s2222_s23  }
  0x2a   : > { %p2739_p13 = scmp.ne.s32.totalorder %s2737_s30, 0 }
  0x2b   : > { %p2740_p1 = scmp.eq.s32.totalorder (!%p2739_p13), %s2277_s22, 0 }
  0x2c   : > { %207 = sbr.rel (%p2739_p13) target bundleno = 625 (0x271), region = 40 }
  0x33   : > { %2197 = dma.done.wait (%p2740_p1), [#allocation4], 3072   ;;  %p2741_p0 = pmov %p2740_p1 }
  0x34   : > { %s1689_s6 = sshll.u32 %s2277_s22, 2  ;;  %vm294_vm0 = vsmask.f32 3328  ;;  %v2080_v0 = vld [vmem:[%s2727_s1 + $0x20] sm:$0xff]   ;;  %v2081_v1 = vld [vmem:[%s2727_s1 + $0x28] sm:$0xff]   ;;  %v2082_v2 = vld [vmem:[%s2727_s1 + $0x30] sm:$0xff]  }
  0x35   : > { %2199 = vsyncadd (%p2741_p0), [#allocation4], 4294964224  ;;  %p237_p5 = scmp.lt.s32.totalorder %s1689_s6, 7  ;;  %1873 = vmatprep.subr.bf16.mxu0 %v2080_v0  ;;  %vm295_vm1 = vsmask.f32 7440  ;;  %v2083_v11 = vld [vmem:[%s2727_s1 + $0x38] sm:$0xff]  }
  0x36   : > { %1874 = vmatpush3.bf16.msra.mxu0 %v2080_v0  ;;  %vm2387_vm2 = vmor %vm294_vm0, %vm295_vm1  ;;  %vm438_vm3 = vcmask 523264   ;;  %v2084_v34 = vld [vmem:[%s2727_s1] sm:$0xff]   ;;  %vm246_vm4 = vsmask.f32 256  ;;  %vm260_vm5 = vsmask.f32 7938 }
  0x37   : > { %s2761_s6 = smov (!%p237_p5, %s1689_s6), 7  ;;  %1875 = vmatprep.subr.bf16.mxu0 %v2081_v1  ;;  %vm649_vm6 = vcmask 1042432   ;;  %vm245_vm7 = vcmask 1040384   ;;  %vm650_vm8 = vcmask 1046532   ;;  %vm939_vm12 = vcmask 1043456   ;;  %s233_s26 = sand.u32 1, %s2210_s19  }
  0x38   : > { %s2025_s9 = smul.u32 12, %s2761_s6  ;;  %vm2445_vm9 = vmand %vm245_vm7, %vm246_vm4  ;;  %vm857_vm13 = vsmask.f32 4368  ;;  %s1688_s6 = sshll.u32 %s233_s26, 6 }
  0x39   : > { %vm2455_vm10 = vmand %vm245_vm7, %vm260_vm5  ;;  %s235_s10 = scalar_lea.vmem [#allocation6], %s1688_s6  ;;  %s1812_s11 = sshll.u32 %s2277_s22, 10 }
  0x3a   : > { %s2349_s13 = scalar_lea.vmem %s2726_s0, %s2025_s9  ;;  %1876 = vmatpush3.bf16.msra.mxu0 %v2081_v1  ;;  %v2085_v1 = vld [vmem:[%s2727_s1 + $0x8] sm:$0xff]   ;;  %vm2490_vm11 = vmor %vm649_vm6, %vm650_vm8  ;;  %s1608_s7 = sshll.u32 %s235_s10, 4  ;;  %s2676_s7 = int_to_ptr.vmem [resolvable:$true] %s1608_s7 }
  0x3b   : > { %v2355_v3 = vld [vmem:[%s2349_s13] sm:$0xf]  ;;  %v2358_v4 = vld [vmem:[%s2349_s13 + $0x4] sm:$0xf]  ;;  %v2361_v5 = vld [vmem:[%s2349_s13 + $0x8] sm:$0x1]  ;;  %1877 = vmatprep.subr.bf16.mxu0 %v2082_v2  ;;  %s2681_s14 = scalar_lea.hbm %s2731_s5, %s1812_s11 }
  0x3c   : > { %v298_v6 = vshrl.u32 %v2355_v3, 16  ;;  %v301_v7 = vshll.u32 %v2355_v3, 16  ;;  %v307_v8 = vshll.u32 %v2358_v4, 16  ;;  %v311_v9 = vshrl.u32 %v2358_v4, 16  ;;  %v2368_v10 = vld [vmem:[%s2349_s13 + $0xc] sm:$0xf]  ;;  %vm2563_vm14 = vmand %vm939_vm12, %vm260_vm5 }
  0x3d   : > { %v317_v12 = vshll.u32 %v2361_v5, 16  ;;  %v2375_v13 = vld [vmem:[%s2349_s13 + $0x10] sm:$0xf]  ;;  %v2378_v14 = vld [vmem:[%s2349_s13 + $0x14] sm:$0x1]  ;;  %v322_v20 = vshrl.u32 %v2368_v10, 16  ;;  %vm2570_vm15 = vmor %vm246_vm4, %vm857_vm13 }
  0x3e   : > { %v300_v15 = vrot.slane %v298_v6, 4  ;;  %v303_v16 = vrot.slane %v301_v7, 5  ;;  %v309_v17 = vrot.slane %v307_v8, 5  ;;  %v313_v18 = vrot.slane %v311_v9, 4  ;;  %1878 = vmatpush3.bf16.msra.mxu0 %v2082_v2  ;;  %v2395_v35 = vld [vmem:[%s2349_s13 + $0x18] sm:$0xf] }
  0x3f   : > { %v319_v19 = vrot.slane %v317_v12, 5  ;;  %v325_v21 = vshll.u32 %v2368_v10, 16  ;;  %v331_v22 = vshll.u32 %v2375_v13, 16  ;;  %v335_v25 = vshrl.u32 %v2375_v13, 16  ;;  %1879 = vmatprep.subr.bf16.mxu0 %v2083_v11  ;;  %v2398_v38 = vld [vmem:[%s2349_s13 + $0x1c] sm:$0xf] }
  0x40   : > { %v304_v23 = vor.u32 %v303_v16, %v300_v15  ;;  %v314_v24 = vor.u32 %v313_v18, %v309_v17  ;;  %v341_v26 = vshll.u32 %v2378_v14, 16  ;;  %v324_v28 = vrot.slane %v322_v20, 4  ;;  %v2401_v39 = vld [vmem:[%s2349_s13 + $0x20] sm:$0x1]  ;;  %v2410_v45 = vld [vmem:[%s2349_s13 + $0x24] sm:$0xf] }
  0x41   : > { %v327_v29 = vrot.slane %v325_v21, 5  ;;  %v333_v30 = vrot.slane %v331_v22, 5  ;;  %v337_v33 = vrot.slane %v335_v25, 4  ;;  %v346_v40 = vshrl.u32 %v2395_v35, 16  ;;  %v2413_v46 = vld [vmem:[%s2349_s13 + $0x28] sm:$0xf] }
  0x42   : > { %v305_v31 = vrot.slane %v304_v23, 4  ;;  %v315_v32 = vrot.slane %v314_v24, 4  ;;  %v343_v37 = vrot.slane %v341_v26, 5  ;;  %v349_v44 = vshll.u32 %v2395_v35, 16  ;;  %v2417_v51 = vld [vmem:[%s2349_s13 + $0x2c] sm:$0x1]  ;;  %1880 = vmatpush3.bf16.msra.mxu0 %v2083_v11 }
  0x43   : > { %v328_v36 = vor.u32 %v327_v29, %v324_v28  ;;  %v338_v43 = vor.u32 %v337_v33, %v333_v30  ;;  %v348_v49 = vrot.slane %v346_v40, 4  ;;  %v355_v50 = vshll.u32 %v2398_v38, 16  ;;  %1889 = vmatprep.subr.bf16.mxu0 %v2084_v34  ;;  %v2096_v20 = vld [vmem:[#allocation3] sm:$0xff]   ;;  %v2087_v40 = vld [vmem:[%s2727_s1 + $0x18] sm:$0xff]   ;;  %s2685_s22 = scalar_lea.sflag [#allocation5], %s233_s26  ;;  %s2152_s15 = scalar_lea.vmem %s2676_s7, 1024 }
  0x44   : > { %v310_v41 = vsel %vm2387_vm2, %v305_v31, %v309_v17  ;;  %v320_v42 = vsel %vm2387_vm2, %v315_v32, %v319_v19  ;;  %v351_v53 = vrot.slane %v349_v44, 5  ;;  %v359_v54 = vshrl.u32 %v2398_v38, 16  ;;  %v2086_v22 = vld [vmem:[%s2727_s1 + $0x10] sm:$0xff]   ;;  %1945 = vmatprep.subr.bf16.mxu1 %v2096_v20  ;;  %v637_v32 = vld [vmem:[%s2349_s13] sm:$0xe]  ;;  %p2153_p6 = scmp.ne.s32.totalorder %s2676_s7, %s2152_s15  ;;  %p2754_p9 = scmp.ne.s32.totalorder %s2735_s28, 0 }
  0x45   : > { %v1699_v47 = vcombine.low %v310_v41, %v320_v42  ;;  %v329_v48 = vrot.slane %v328_v36, 4  ;;  %v339_v52 = vrot.slane %v338_v43, 4  ;;  %v365_v55 = vshll.u32 %v2401_v39, 16  ;;  %1946 = vmatpush3.bf16.msra.mxu1 %v2096_v20  ;;  %v638_v41 = vld [vmem:[%s2349_s13 + $0xc] sm:$0xe]  ;;  %s2223_s16 = smov [#allocation6]  }
  0x46   : > { %v357_v57 = vrot.slane %v355_v50, 5  ;;  %v370_v58 = vshrl.u32 %v2410_v45, 16  ;;  %v373_v59 = vshll.u32 %v2410_v45, 16  ;;  %v352_v61 = vor.u32 %v351_v53, %v348_v49  ;;  %v639_v42 = vld [vmem:[%s2349_s13 + $0x18] sm:$0xe]  ;;  %p2154_p10 = pnand %p2153_p6, %p2754_p9  ;;  %s2156_s17 = sshll.u32 %s2223_s16, 4  ;;  %s2157_s17 = int_to_ptr.vmem [resolvable:$false] %s2156_s17 }
  0x47   : > { %1881 = vmatprep.mubr.msk.bf16.mxu0 %vm438_vm3, %v1699_v47  ;;  %v334_v56 = vsel %vm2387_vm2, %v329_v48, %v333_v30  ;;  %v344_v60 = vsel %vm2387_vm2, %v339_v52, %v343_v37  ;;  %v361_v62 = vrot.slane %v359_v54, 4  ;;  %v367_v63 = vrot.slane %v365_v55, 5  ;;  %v2097_v48 = vld [vmem:[#allocation3 + $0x8] sm:$0xff]   ;;  %v251_v49 = vld [vmem:[#allocation2 + $0xc] sm:$0x1]  ;;  %v2090_v52 = vld [vmem:[%s2727_s1 + $0x40] sm:$0xff]   ;;  %p2159_p2 = scmp.lt.s32.totalorder %s2676_s7, %s2157_s17 }
  0x48   : > { %v1700_v0 = vcombine.low %v334_v56, %v344_v60  ;;  %v372_v2 = vrot.slane %v370_v58, 4  ;;  %v375_v6 = vrot.slane %v373_v59, 5  ;;  %v379_v7 = vshll.u32 %v2413_v46, 16  ;;  %v262_v55 = vld [vmem:[#allocation2 + $0x8] sm:$0x1]  ;;  %1947 = vmatprep.subr.bf16.mxu1 %v2097_v48  ;;  %p2155_p12 = pneg %p2154_p10  ;;  %s2158_s23 = scalar_lea.vmem %s2157_s17, 2048 }
  0x49   : > { %v353_v8 = vrot.slane %v352_v61, 4  ;;  %v362_v9 = vor.u32 %v361_v62, %v357_v57  ;;  %v383_v11 = vshrl.u32 %v2413_v46, 16  ;;  %v389_v12 = vshll.u32 %v2417_v51, 16  ;;  %v265_v56 = vld [vmem:[#allocation2 + $0x14] sm:$0x1]  ;;  %1948 = vmatpush3.bf16.msra.mxu1 %v2097_v48  ;;  %p2160_p3 = scmp.lt.s32.totalorder %s2158_s23, %s2152_s15 }
  0x4a   : > { %1882 = vmatmul.mubr.msk.bf16.vlgmr.msra.gmra.mrb[0].mxu0 %vm438_vm3, %v1700_v0  ;;  %v376_v15 = vor.u32 %v375_v6, %v372_v2  ;;  %v381_v16 = vrot.slane %v379_v7, 5  ;;  %v657_v23 = vrot.slane %v2361_v5, 5  ;;  %v661_v29 = vrot.slane %v2375_v13, 5  ;;  %v271_v0 = vld [vmem:[#allocation2 + $0x2c] sm:$0x1]  ;;  %v2549_v48 = vld [vmem:[#allocation3 + $0x80] sm:$0xff]  }
  0x4b   : > { %1890 = vmatpush3.bf16.msra.mxu0 %v2084_v34  ;;  %v358_v17 = vsel %vm2387_vm2, %v353_v8, %v357_v57  ;;  %v363_v18 = vrot.slane %v362_v9, 4  ;;  %v385_v19 = vrot.slane %v383_v11, 4  ;;  %v391_v26 = vrot.slane %v389_v12, 5  ;;  %v2091_v7 = vld [vmem:[%s2727_s1 + $0x48] sm:$0xff]   ;;  %v2094_v9 = vld [vmem:[%s2727_s1 + $0x50] sm:$0xff]   ;;  %p2161_p4 = por %p2160_p3, %p2159_p2 }
  0x4c   : > { %1891 = vmatprep.subr.bf16.mxu0 %v2085_v1  ;;  %v377_v21 = vrot.slane %v376_v15, 4  ;;  %v664_v30 = vrot.slane %v2378_v14, 5  ;;  %v654_v33 = vrot.slane %v2358_v4, 5  ;;  %v1711_v44 = vcombine.low %v2355_v3, %v2358_v4  ;;  %v268_v4 = vld [vmem:[#allocation2 + $0x20] sm:$0x1] }
  0x4d   : > { %v368_v24 = vsel %vm2387_vm2, %v363_v18, %v367_v63  ;;  %v386_v25 = vor.u32 %v385_v19, %v381_v16  ;;  %v668_v47 = vrot.slane %v2398_v38, 5  ;;  %v1723_v53 = vrot.slane %v637_v32, 9  ;;  %v640_v18 = vld [vmem:[%s2349_s13 + $0x24] sm:$0xe]  ;;  %p2162_p7 = pnand %p2161_p4, %p2155_p12 }
  0x4e   : > { %v1701_v31 = vcombine.low %v358_v17, %v368_v24  ;;  %v382_v36 = vsel %vm2387_vm2, %v377_v21, %v381_v16  ;;  %v656_v54 = vrot.slane %v654_v33, 4  ;;  %v1724_v57 = vrot.slane %v638_v41, 9  ;;  %v2098_v24 = vld [vmem:[#allocation3 + $0x10] sm:$0xff]   ;;  %v2105_v41 = vld [vmem:[#allocation3 + $0x58] sm:$0xff]  }
  0x4f   : > { %1892 = vmatpush3.bf16.msra.mxu0 %v2085_v1  ;;  %v387_v37 = vrot.slane %v386_v25, 4  ;;  %v663_v58 = vrot.slane %v661_v29, 4  ;;  %v1725_v59 = vrot.slane %v639_v42, 9  ;;  %v252_v3 = vsel %vm2445_vm9, 0, %v251_v49  ;;  %1949 = vmatprep.subr.bf16.mxu1 %v2098_v24  ;;  %v2099_v25 = vld [vmem:[#allocation3 + $0x40] sm:$0xff]   ;;  %v2106_v42 = vld [vmem:[#allocation3 + $0x30] sm:$0xff]  }
  0x50   : > { %1885 = vmatprep.mubr.msk.bf16.mxu0 %vm438_vm3, %v1701_v31  ;;  %1893 = vmatprep.subr.bf16.mxu0 %v2086_v22  ;;  %v671_v60 = vrot.slane %v2401_v39, 5  ;;  %253 = vst [vmem:[#allocation2 + $0xc] sm:$0x1] %v252_v3  ;;  %v263_v61 = vsel %vm2455_vm10, 0, %v262_v55  ;;  %v266_v62 = vsel %vm2455_vm10, 0, %v265_v56  ;;  %v269_v63 = vsel %vm2455_vm10, 0, %v268_v4 }
  0x51   : > { %v392_v43 = vsel %vm2387_vm2, %v387_v37, %v391_v26  ;;  %v670_v39 = vrot.slane %v668_v47, 4  ;;  %264 = vst [vmem:[#allocation2 + $0x8] sm:$0x1] %v263_v61  ;;  %267 = vst [vmem:[#allocation2 + $0x14] sm:$0x1] %v266_v62  ;;  %v272_v2 = vsel %vm2455_vm10, 0, %v271_v0  ;;  %v1712_v6 = vcombine.low %v2368_v10, %v2375_v13  ;;  %1950 = vmatpush3.bf16.msra.mxu1 %v2098_v24 }
  0x52   : > { %v1702_v50 = vcombine.low %v382_v36, %v392_v43  ;;  %270 = vst [vmem:[#allocation2 + $0x20] sm:$0x1] %v269_v63  ;;  %273 = vst [vmem:[#allocation2 + $0x2c] sm:$0x1] %v272_v2  ;;  %v1713_v8 = vcombine.low %v2395_v35, %v2398_v38  ;;  %v655_v10 = vsel %vm2490_vm11, %v1723_v53, %v654_v33  ;;  %v2095_v38 = vld [vmem:[%s2727_s1 + $0x58] sm:$0xff]   ;;  %v675_v15 = vrot.slane %v2413_v46, 5 }
  0x53   : > { %1894 = vmatpush3.bf16.msra.mxu0 %v2086_v22  ;;  %v658_v11 = vsel %vm2490_vm11, %v656_v54, %v657_v23  ;;  %v1714_v35 = vcombine.low %v2410_v45, %v2413_v46  ;;  %v662_v5 = vsel %vm2490_vm11, %v1724_v57, %v661_v29  ;;  %v665_v45 = vsel %vm2490_vm11, %v663_v58, %v664_v30  ;;  %v248_v26 = vld [vmem:[#allocation2] sm:$0x1]  ;;  %v2100_v29 = vld [vmem:[#allocation3 + $0x18] sm:$0xff]   ;;  %v2101_v30 = vld [vmem:[#allocation3 + $0x48] sm:$0xff]  }
  0x54   : > { %1886 = vmatmul.mubr.msk.bf16.gmra.mrb[4].mxu0 %vm438_vm3, %v1702_v50  ;;  %1895 = vmatprep.subr.bf16.mxu0 %v2087_v40  ;;  %v1735_v12 = vcombine.low %v655_v10, %v658_v11  ;;  %v669_v16 = vsel %vm2490_vm11, %v1725_v59, %v668_v47  ;;  %v672_v17 = vsel %vm2490_vm11, %v670_v39, %v671_v60  ;;  %v1726_v20 = vrot.slane %v640_v18, 9  ;;  %v257_v31 = vld [vmem:[#allocation2 + $0x24] sm:$0x1]  ;;  %v254_v33 = vld [vmem:[#allocation2 + $0x18] sm:$0x1]  ;;  %v2102_v36 = vld [vmem:[#allocation3 + $0x20] sm:$0xff]  }
  0x55   : > { %1897 = vmatprep.mubr.msk.bf16.mxu0 %vm438_vm3, %v1711_v44  ;;  %v1736_v19 = vcombine.low %v662_v5, %v665_v45  ;;  %v1737_v13 = vcombine.low %v669_v16, %v672_v17  ;;  %v677_v21 = vrot.slane %v675_v15, 4  ;;  %v678_v14 = vrot.slane %v2417_v51, 5  ;;  %1951 = vmatprep.subr.bf16.mxu1 %v2100_v29  ;;  %v2103_v37 = vld [vmem:[#allocation3 + $0x50] sm:$0xff]   ;;  %v2107_v43 = vld [vmem:[#allocation3 + $0x60] sm:$0xff]   ;;  %v2108_v44 = vld [vmem:[#allocation3 + $0x38] sm:$0xff]  }
  0x56   : > { %v676_v46 = vsel %vm2490_vm11, %v1726_v20, %v675_v15  ;;  %v249_v51 = vsel %vm2445_vm9, 0, %v248_v26  ;;  %1952 = vmatpush3.bf16.msra.mxu1 %v2100_v29  ;;  %v258_v32 = vsel %vm2445_vm9, 0, %v257_v31  ;;  %v255_v34 = vsel %vm2445_vm9, 0, %v254_v33  ;;  %v2109_v47 = vld [vmem:[#allocation3 + $0x68] sm:$0xff]   ;;  %v2113_v49 = vld [vmem:[#allocation3 + $0x70] sm:$0xff]   ;;  %v2115_v50 = vld [vmem:[#allocation3 + $0x78] sm:$0xff]  }
  0x57   : > { %1896 = vmatpush3.bf16.msra.mxu0 %v2087_v40  ;;  %v679_v22 = vsel %vm2490_vm11, %v677_v21, %v678_v14  ;;  %250 = vst [vmem:[#allocation2] sm:$0x1] %v249_v51  ;;  %259 = vst [vmem:[#allocation2 + $0x24] sm:$0x1] %v258_v32  ;;  %1953 = vmatprep.subr.bf16.mxu1 %v2102_v36  ;;  %v2104_v40 = vld [vmem:[#allocation3 + $0x28] sm:$0xff]  }
  0x58   : > { %1905 = vmatprep.subr.bf16.mxu0 %v2090_v52  ;;  %v1738_v23 = vcombine.low %v676_v46, %v679_v22  ;;  %256 = vst [vmem:[#allocation2 + $0x18] sm:$0x1] %v255_v34  ;;  %v948_v15 = vld [vmem:[#allocation2 + $0xc] sm:$0xf]  ;;  %v952_v51 = vld [vmem:[#allocation2 + $0x14] sm:$0x1] }
  0x59   : > { %v945_v34 = vld [vmem:[#allocation2 + $0x8] sm:$0x1] }
  0x5a   : > { %1954 = vmatpush3.bf16.msra.mxu1 %v2102_v36 }
  0x5b   : > { %1955 = vmatprep.subr.bf16.mxu1 %v2104_v40 }
  0x5c   : > { %1898 = vmatmul.mubr.msk.bf16.vlgmr.msra.gmra.mrb[0].mxu0 %vm438_vm3, %v1712_v6 }
  0x5d   : > { %1906 = vmatpush3.bf16.msra.mxu0 %v2090_v52  ;;  %1901 = vmatprep.mubr.msk.bf16.mxu0 %vm438_vm3, %v1713_v8  ;;  %v2555_v52 = vld [vmem:[%s2728_s2] ss:$0 sm:$0xff] }
  0x5e   : > { %1907 = vmatprep.subr.bf16.mxu0 %v2091_v7  ;;  %1956 = vmatpush3.bf16.msra.mxu1 %v2104_v40  ;;  %v941_v14 = vld [vmem:[#allocation2] sm:$0xf] }
  0x5f   : > { %1957 = vmatprep.subr.bf16.mxu1 %v2106_v42 }
  0x61   : > { %1908 = vmatpush3.bf16.msra.mxu0 %v2091_v7 }
  0x62   : > { %1909 = vmatprep.subr.bf16.mxu0 %v2094_v9  ;;  %1958 = vmatpush3.bf16.msra.mxu1 %v2106_v42 }
  0x63   : > { %1959 = vmatprep.subr.bf16.mxu1 %v2108_v44 }
  0x64   : > { %1902 = vmatmul.mubr.msk.bf16.gmra.mrb[4].mxu0 %vm438_vm3, %v1714_v35 }
  0x65   : > { %1910 = vmatpush3.bf16.msra.mxu0 %v2094_v9  ;;  %1913 = vmatprep.mubr.msk.bf16.mxu0 %vm438_vm3, %v1735_v12 }
  0x66   : > { %1911 = vmatprep.subr.bf16.mxu0 %v2095_v38  ;;  %1960 = vmatpush3.bf16.msra.mxu1 %v2108_v44 }
  0x67   : > { %1969 = vmatprep.subr.bf16.mxu1 %v2549_v48 }
  0x69   : > { %1912 = vmatpush3.bf16.msra.mxu0 %v2095_v38 }
  0x6a   : > { %1921 = vmatprep.subr.bf16.mxu0 %v2099_v25 }
  0x6c   : > { %1914 = vmatmul.mubr.msk.bf16.vlgmr.msra.gmra.mrb[0].mxu0 %vm438_vm3, %v1736_v19 }
  0x6d   : > { %1917 = vmatprep.mubr.msk.bf16.mxu0 %vm438_vm3, %v1737_v13  ;;  %1922 = vmatpush3.bf16.msra.mxu0 %v2099_v25 }
  0x6e   : > { %1923 = vmatprep.subr.bf16.mxu0 %v2101_v30 }
  0x71   : > { %1924 = vmatpush3.bf16.msra.mxu0 %v2101_v30 }
  0x72   : > { %1925 = vmatprep.subr.bf16.mxu0 %v2103_v37 }
  0x74   : > { %1918 = vmatmul.mubr.msk.bf16.gmra.mrb[4].mxu0 %vm438_vm3, %v1738_v23 }
  0x75   : > { %1926 = vmatpush3.bf16.msra.mxu0 %v2103_v37 }
  0x76   : > { %1927 = vmatprep.subr.bf16.mxu0 %v2105_v41 }
  0x79   : > { %1928 = vmatpush3.bf16.msra.mxu0 %v2105_v41 }
  0x7a   : > { %1929 = vmatprep.subr.bf16.mxu0 %v2107_v43 }
  0x7d   : > { %1930 = vmatpush3.bf16.msra.mxu0 %v2107_v43 }
  0x7e   : > { %1931 = vmatprep.subr.bf16.mxu0 %v2109_v47 }
  0x81   : > { %1932 = vmatpush3.bf16.msra.mxu0 %v2109_v47 }
  0x82   : > { %1933 = vmatprep.subr.bf16.mxu0 %v2113_v49 }
  0x85   : > { %1934 = vmatpush3.bf16.msra.mxu0 %v2113_v49 }
  0x86   : > { %1935 = vmatprep.subr.bf16.mxu0 %v2115_v50 }
  0x89   : > { %1936 = vmatpush3.bf16.msra.mxu0 %v2115_v50 }
 0x13f   : > { %v1915_v53 = vpop.f32.mrb[0].mxu0 }
 0x140   : > { %v819_v54 = vadd.f32 %v1915_v53, %v2555_v52  ;;  %v771_v55 = vpop.f32.mrb[1].mxu0 }
 0x141   : > { %v817_v56 = vadd.f32 %v2555_v52, %v771_v55  ;;  %v1916_v57 = vpop.f32.mrb[2].mxu0 }
 0x142   : > { %v827_v58 = vmax.f32 %v819_v54, 0.0  ;;  %v820_v59 = vadd.f32 %v1916_v57, %v2555_v52  ;;  %v774_v3 = vpop.f32.mrb[3].mxu0 }
 0x143   : > { %v825_v4 = vmax.f32 %v817_v56, 0.0  ;;  %v818_v60 = vadd.f32 %v2555_v52, %v774_v3 }
 0x144   : > { %v1805_v61 = vpack.c.bf16 %v827_v58, %v827_v58  ;;  %v828_v62 = vmax.f32 %v820_v59, 0.0  ;;  %v962_v58 = vld [vmem:[#allocation2 + $0x24] sm:$0xf] }
 0x145   : > { %v1803_v63 = vpack.c.bf16 %v825_v4, %v825_v4  ;;  %v826_v0 = vmax.f32 %v818_v60, 0.0  ;;  %v955_v60 = vld [vmem:[#allocation2 + $0x18] sm:$0xf] }
 0x146   : > { %v877_v39 = vshrl.u32 %v1805_v61, 16  ;;  %v1806_v2 = vpack.c.bf16 %v828_v62, %v828_v62  ;;  %v880_v6 = vshll.u32 %v1805_v61, 16 }
 0x147   : > { %v860_v7 = vshrl.u32 %v1803_v63, 16  ;;  %v863_v8 = vshll.u32 %v1803_v63, 16  ;;  %v1804_v9 = vpack.c.bf16 %v826_v0, %v826_v0  ;;  %v1919_v10 = vpop.f32.mrb[4].mxu0 }
 0x148   : > { %v879_v11 = vrot.slane %v877_v39, 7  ;;  %v885_v35 = vshrl.u32 %v1806_v2, 16  ;;  %v888_v38 = vshll.u32 %v1806_v2, 16  ;;  %v823_v12 = vadd.f32 %v1919_v10, %v2555_v52  ;;  %v787_v5 = vpop.f32.mrb[5].mxu0 }
 0x149   : > { %v862_v16 = vrot.slane %v860_v7, 7  ;;  %v868_v17 = vshrl.u32 %v1804_v9, 16  ;;  %v871_v18 = vshll.u32 %v1804_v9, 16  ;;  %v821_v19 = vadd.f32 %v2555_v52, %v787_v5  ;;  %v1920_v13 = vpop.f32.mrb[6].mxu0 }
 0x14a   : > { %v882_v20 = vor.u32 %v880_v6, %v879_v11  ;;  %v883_v21 = vrot.slane %v879_v11, 4  ;;  %v887_v46 = vrot.slane %v885_v35, 7  ;;  %v831_v22 = vmax.f32 %v823_v12, 0.0  ;;  %v790_v23 = vpop.f32.mrb[7].mxu0 }
 0x14b   : > { %v865_v24 = vor.u32 %v863_v8, %v862_v16  ;;  %v866_v25 = vrot.slane %v862_v16, 4  ;;  %v870_v29 = vrot.slane %v868_v17, 7  ;;  %v829_v30 = vmax.f32 %v821_v19, 0.0 }
 0x14c   : > { %v949_v31 = vsel %vm2563_vm14, %v882_v20, %v948_v15  ;;  %v890_v32 = vor.u32 %v888_v38, %v887_v46  ;;  %v892_v33 = vrot.slane %v887_v46, 4  ;;  %v1809_v36 = vpack.c.bf16 %v831_v22, %v831_v22  ;;  %v959_v46 = vld [vmem:[#allocation2 + $0x20] sm:$0x1] }
 0x14d   : > { %950 = vst [vmem:[#allocation2 + $0xc] sm:$0xf] %v949_v31  ;;  %v942_v37 = vsel %vm2563_vm14, %v865_v24, %v941_v14  ;;  %v873_v40 = vor.u32 %v871_v18, %v870_v29  ;;  %v875_v41 = vrot.slane %v870_v29, 4  ;;  %v1807_v42 = vpack.c.bf16 %v829_v30, %v829_v30 }
 0x14e   : > { %943 = vst [vmem:[#allocation2] sm:$0xf] %v942_v37  ;;  %v891_v43 = vsel %vm2570_vm15, %v883_v21, %v890_v32  ;;  %v953_v44 = vsel %vm2445_vm9, %v892_v33, %v952_v51  ;;  %v911_v47 = vshrl.u32 %v1809_v36, 16  ;;  %v914_v55 = vshll.u32 %v1809_v36, 16 }
 0x14f   : > { %951 = vst [vmem:[#allocation2 + $0x10] sm:$0xf] %v891_v43  ;;  %954 = vst [vmem:[#allocation2 + $0x14] sm:$0x1] %v953_v44  ;;  %v874_v49 = vsel %vm2570_vm15, %v866_v25, %v873_v40  ;;  %v946_v50 = vsel %vm2445_vm9, %v875_v41, %v945_v34  ;;  %v894_v53 = vshrl.u32 %v1807_v42, 16  ;;  %v824_v56 = vadd.f32 %v1920_v13, %v2555_v52 }
 0x150   : > { %944 = vst [vmem:[#allocation2 + $0x4] sm:$0xf] %v874_v49  ;;  %947 = vst [vmem:[#allocation2 + $0x8] sm:$0x1] %v946_v50  ;;  %v913_v54 = vrot.slane %v911_v47, 7  ;;  %v822_v57 = vadd.f32 %v2555_v52, %v790_v23  ;;  %v897_v3 = vshll.u32 %v1807_v42, 16 }
 0x151   : > { %v896_v59 = vrot.slane %v894_v53, 7  ;;  %v832_v61 = vmax.f32 %v824_v56, 0.0  ;;  %v966_v13 = vld [vmem:[#allocation2 + $0x2c] sm:$0x1]  ;;  %v2114_v50 = vld [vmem:[#allocation3 + $0x88] sm:$0xff]  }
 0x152   : > { %v916_v4 = vor.u32 %v914_v55, %v913_v54  ;;  %v830_v62 = vmax.f32 %v822_v57, 0.0  ;;  %v917_v7 = vrot.slane %v913_v54, 4 }
 0x153   : > { %v899_v63 = vor.u32 %v897_v3, %v896_v59  ;;  %v1810_v39 = vpack.c.bf16 %v832_v61, %v832_v61  ;;  %v900_v14 = vrot.slane %v896_v59, 4 }
 0x154   : > { %v963_v0 = vsel %vm2563_vm14, %v916_v4, %v962_v58  ;;  %v1808_v2 = vpack.c.bf16 %v830_v62, %v830_v62  ;;  %v971_v6 = vld [vmem:[#allocation2 + $0xc] sm:$0xf] }
 0x155   : > { %964 = vst [vmem:[#allocation2 + $0x24] sm:$0xf] %v963_v0  ;;  %v956_v8 = vsel %vm2563_vm14, %v899_v63, %v955_v60  ;;  %v969_v52 = vld [vmem:[#allocation2] sm:$0xf]  ;;  %v1022_v9 = vshrl.u32 %v971_v6, 16  ;;  %v1025_v10 = vshll.u32 %v971_v6, 16 }
 0x156   : > { %957 = vst [vmem:[#allocation2 + $0x18] sm:$0xf] %v956_v8  ;;  %v919_v11 = vshrl.u32 %v1810_v39, 16  ;;  %v922_v35 = vshll.u32 %v1810_v39, 16  ;;  %v902_v38 = vshrl.u32 %v1808_v2, 16  ;;  %v905_v12 = vshll.u32 %v1808_v2, 16 }
 0x157   : > { %v2592_v5 = vld [vmem:[#allocation2 + $0x4] sm:$0xf]  ;;  %v998_v15 = vshrl.u32 %v969_v52, 16  ;;  %v1001_v16 = vshll.u32 %v969_v52, 16  ;;  %v1024_v17 = vrot.slane %v1022_v9, 4  ;;  %v1027_v18 = vrot.slane %v1025_v10, 5 }
 0x158   : > { %v921_v19 = vrot.slane %v919_v11, 7  ;;  %v904_v20 = vrot.slane %v902_v38, 7  ;;  %v1007_v45 = vshll.u32 %v2592_v5, 16  ;;  %v1011_v21 = vshrl.u32 %v2592_v5, 16  ;;  %v2597_v31 = vld [vmem:[#allocation2 + $0x10] sm:$0xf] }
 0x159   : > { %v1000_v22 = vrot.slane %v998_v15, 4  ;;  %v1003_v23 = vrot.slane %v1001_v16, 5  ;;  %v1768_v24 = vcombine.low %v969_v52, %v2592_v5  ;;  %v1028_v36 = vor.u32 %v1027_v18, %v1024_v17  ;;  %v993_v43 = vld [vmem:[#allocation2 + $0x8] sm:$0x1]  ;;  %v1376_v57 = vld [vmem:[#allocation2] sm:$0xe] }
 0x15a   : > { %v924_v25 = vor.u32 %v922_v35, %v921_v19  ;;  %v926_v51 = vrot.slane %v921_v19, 4  ;;  %v907_v29 = vor.u32 %v905_v12, %v904_v20  ;;  %v909_v30 = vrot.slane %v904_v20, 4  ;;  %v2611_v4 = vld [vmem:[#allocation2 + $0x14] sm:$0x1]  ;;  %v2117_v8 = vld [vmem:[#allocation3 + $0x90] sm:$0xff]  }
 0x15b   : > { %v1004_v32 = vor.u32 %v1003_v23, %v1000_v22  ;;  %v1009_v33 = vrot.slane %v1007_v45, 5  ;;  %v1013_v34 = vrot.slane %v1011_v21, 4  ;;  %1961 = vmatprep.mubr.bf16.mxu1 %v1768_v24  ;;  %v1031_v47 = vshll.u32 %v2597_v31, 16  ;;  %v2119_v23 = vld [vmem:[#allocation3 + $0x98] sm:$0xff]  }
 0x15c   : > { %v925_v37 = vsel %vm2570_vm15, %v917_v7, %v924_v25  ;;  %v967_v40 = vsel %vm2445_vm9, %v926_v51, %v966_v13  ;;  %v908_v41 = vsel %vm2570_vm15, %v900_v14, %v907_v29  ;;  %v960_v42 = vsel %vm2445_vm9, %v909_v30, %v959_v46  ;;  %v975_v56 = vld [vmem:[#allocation2 + $0x24] sm:$0xf] }
 0x15d   : > { %965 = vst [vmem:[#allocation2 + $0x28] sm:$0xf] %v925_v37  ;;  %968 = vst [vmem:[#allocation2 + $0x2c] sm:$0x1] %v967_v40  ;;  %v1005_v44 = vrot.slane %v1004_v32, 4  ;;  %v1035_v49 = vshrl.u32 %v2597_v31, 16  ;;  %v1769_v54 = vcombine.low %v971_v6, %v2597_v31  ;;  %v1014_v3 = vor.u32 %v1013_v34, %v1009_v33 }
 0x15e   : > { %958 = vst [vmem:[#allocation2 + $0x1c] sm:$0xf] %v908_v41  ;;  %961 = vst [vmem:[#allocation2 + $0x20] sm:$0x1] %v960_v42  ;;  %v973_v53 = vld [vmem:[#allocation2 + $0x18] sm:$0xf] }
 0x15f   : > { %v1046_v55 = vshrl.u32 %v973_v53, 16  ;;  %v1049_v26 = vshll.u32 %v973_v53, 16  ;;  %v1390_v28 = vrot.slane %v2592_v5, 5  ;;  %v1033_v58 = vrot.slane %v1031_v47, 5  ;;  %1962 = vmatmul.mubr.bf16.vlgmr.msra.gmra.mrb[0].mxu1 %v1769_v54  ;;  %v2120_v42 = vld [vmem:[#allocation3 + $0xa0] sm:$0xff]  }
 0x160   : > { %v1037_v59 = vrot.slane %v1035_v49, 4  ;;  %v1029_v60 = vrot.slane %v1028_v36, 4  ;;  %v1010_v62 = vsel %vm2387_vm2, %v1005_v44, %v1009_v33  ;;  %v1017_v63 = vshll.u32 %v993_v43, 16  ;;  %1970 = vmatpush3.bf16.msra.mxu1 %v2549_v48 }
 0x161   : > { %v1048_v61 = vrot.slane %v1046_v55, 4  ;;  %v1015_v39 = vrot.slane %v1014_v3, 4  ;;  %v1070_v2 = vshrl.u32 %v975_v56, 16  ;;  %v1073_v6 = vshll.u32 %v975_v56, 16  ;;  %1971 = vmatprep.subr.bf16.mxu1 %v2114_v50 }
 0x162   : > { %v1038_v0 = vor.u32 %v1037_v59, %v1033_v58  ;;  %v1051_v7 = vrot.slane %v1049_v26, 5  ;;  %v1019_v52 = vrot.slane %v1017_v63, 5  ;;  %v1041_v9 = vshll.u32 %v2611_v4, 16 }
 0x163   : > { %v1780_v10 = vrot.slane %v1376_v57, 9  ;;  %v1072_v35 = vrot.slane %v1070_v2, 4  ;;  %v1075_v38 = vrot.slane %v1073_v6, 5  ;;  %v1392_v12 = vrot.slane %v1390_v28, 4  ;;  %v2121_v57 = vld [vmem:[#allocation3 + $0xa8] sm:$0xff]  }
 0x164   : > { %v1039_v11 = vrot.slane %v1038_v0, 4  ;;  %v1020_v15 = vsel %vm2387_vm2, %v1015_v39, %v1019_v52  ;;  %v2621_v48 = vld [vmem:[#allocation2 + $0x28] sm:$0xf]  ;;  %v1034_v16 = vsel %vm2387_vm2, %v1029_v60, %v1033_v58  ;;  %v1043_v17 = vrot.slane %v1041_v9, 5  ;;  %1972 = vmatpush3.bf16.msra.mxu1 %v2114_v50  ;;  %v2638_v32 = vld [vmem:[#allocation2 + $0x2c] sm:$0x1] }
 0x165   : > { %v2617_v5 = vld [vmem:[#allocation2 + $0x1c] sm:$0xf]  ;;  %v1393_v18 = vrot.slane %v993_v43, 5  ;;  %v1756_v20 = vcombine.low %v1010_v62, %v1020_v15  ;;  %v1083_v45 = vshrl.u32 %v2621_v48, 16  ;;  %1973 = vmatprep.subr.bf16.mxu1 %v2117_v8  ;;  %v1771_v21 = vcombine.low %v975_v56, %v2621_v48  ;;  %v2635_v24 = vld [vmem:[#allocation2 + $0x20] sm:$0x1] }
 0x166   : > { %v1059_v19 = vshrl.u32 %v2617_v5, 16  ;;  %v1770_v13 = vcombine.low %v973_v53, %v2617_v5  ;;  %v1044_v14 = vsel %vm2387_vm2, %v1039_v11, %v1043_v17  ;;  %v1391_v46 = vsel %vm2490_vm11, %v1780_v10, %v1390_v28  ;;  %v2122_v62 = vld [vmem:[#allocation3 + $0xb0] sm:$0xff]   ;;  %v2123_v39 = vld [vmem:[#allocation3 + $0xb8] sm:$0xff]  }
 0x167   : > { %v1394_v22 = vsel %vm2490_vm11, %v1392_v12, %v1393_v18  ;;  %1937 = vmatprep.mubr.bf16.mxu0 %v1756_v20  ;;  %v1757_v25 = vcombine.low %v1034_v16, %v1044_v14  ;;  %v1052_v51 = vor.u32 %v1051_v7, %v1048_v61  ;;  %v1055_v29 = vshll.u32 %v2617_v5, 16  ;;  %v1377_v6 = vld [vmem:[#allocation2 + $0xc] sm:$0xe]  ;;  %v1379_v16 = vld [vmem:[#allocation2 + $0x24] sm:$0xe] }
 0x168   : > { %1965 = vmatprep.mubr.bf16.mxu1 %v1770_v13  ;;  %v1061_v30 = vrot.slane %v1059_v19, 4  ;;  %v1784_v33 = vcombine.low %v1391_v46, %v1394_v22  ;;  %v1076_v34 = vor.u32 %v1075_v38, %v1072_v35  ;;  %v1079_v36 = vshll.u32 %v2621_v48, 16  ;;  %1974 = vmatpush3.bf16.msra.mxu1 %v2117_v8  ;;  %v1378_v8 = vld [vmem:[#allocation2 + $0x18] sm:$0xe] }
 0x169   : > { %1966 = vmatmul.mubr.bf16.gmra.mrb[4].mxu1 %v1771_v21  ;;  %1938 = vmatmul.mubr.bf16.vlgmr.msra.gmra.mrb[8].mxu0 %v1757_v25  ;;  %v1057_v37 = vrot.slane %v1055_v29, 5  ;;  %v1065_v40 = vshll.u32 %v2635_v24, 16  ;;  %v1085_v41 = vrot.slane %v1083_v45, 4  ;;  %v1089_v44 = vshll.u32 %v2638_v32, 16 }
 0x16a   : > { %1985 = vmatprep.mubr.bf16.mxu1 %v1784_v33  ;;  %1975 = vmatprep.subr.bf16.mxu1 %v2119_v23  ;;  %v1081_v43 = vrot.slane %v1079_v36, 5  ;;  %v1053_v47 = vrot.slane %v1052_v51, 4  ;;  %v1077_v50 = vrot.slane %v1076_v34, 4  ;;  %v1397_v63 = vrot.slane %v2597_v31, 5  ;;  %v1796_v51 = vld [vmem:[%s2730_s4] ss:$0 sm:$0xff] }
 0x16b   : > { %v1062_v49 = vor.u32 %v1061_v30, %v1057_v37  ;;  %v1067_v55 = vrot.slane %v1065_v40, 5  ;;  %v1091_v56 = vrot.slane %v1089_v44, 5  ;;  %v1404_v0 = vrot.slane %v2617_v5, 5 }
 0x16c   : > { %v1086_v53 = vor.u32 %v1085_v41, %v1081_v43  ;;  %1976 = vmatpush3.bf16.msra.mxu1 %v2119_v23  ;;  %v1058_v28 = vsel %vm2387_vm2, %v1053_v47, %v1057_v37  ;;  %v1082_v3 = vsel %vm2387_vm2, %v1077_v50, %v1081_v43  ;;  %v1399_v2 = vrot.slane %v1397_v63, 4 }
 0x16d   : > { %v1063_v54 = vrot.slane %v1062_v49, 4  ;;  %1977 = vmatprep.subr.bf16.mxu1 %v2120_v42  ;;  %v1406_v7 = vrot.slane %v1404_v0, 4  ;;  %v1400_v27 = vrot.slane %v2611_v4, 5  ;;  %v1407_v52 = vrot.slane %v2635_v24, 5 }
 0x16e   : > { %v1087_v26 = vrot.slane %v1086_v53, 4  ;;  %v1781_v9 = vrot.slane %v1377_v6, 9  ;;  %v1411_v10 = vrot.slane %v2621_v48, 5  ;;  %v1782_v11 = vrot.slane %v1378_v8, 9 }
 0x16f   : > { %v1068_v58 = vsel %vm2387_vm2, %v1063_v54, %v1067_v55  ;;  %v1401_v31 = vsel %vm2490_vm11, %v1399_v2, %v1400_v27  ;;  %v1408_v35 = vsel %vm2490_vm11, %v1406_v7, %v1407_v52  ;;  %v1414_v48 = vrot.slane %v2638_v32, 5 }
 0x170   : > { %v1758_v59 = vcombine.low %v1058_v28, %v1068_v58  ;;  %v1092_v60 = vsel %vm2387_vm2, %v1087_v26, %v1091_v56  ;;  %1978 = vmatpush3.bf16.msra.mxu1 %v2120_v42  ;;  %v1398_v38 = vsel %vm2490_vm11, %v1781_v9, %v1397_v63  ;;  %v1405_v4 = vsel %vm2490_vm11, %v1782_v11, %v1404_v0 }
 0x171   : > { %v1759_v61 = vcombine.low %v1082_v3, %v1092_v60  ;;  %1979 = vmatprep.subr.bf16.mxu1 %v2121_v57  ;;  %v1785_v12 = vcombine.low %v1398_v38, %v1401_v31  ;;  %v1786_v5 = vcombine.low %v1405_v4, %v1408_v35  ;;  %v1413_v15 = vrot.slane %v1411_v10, 4 }
 0x172   : > { %1941 = vmatprep.mubr.bf16.mxu0 %v1758_v59  ;;  %v1783_v17 = vrot.slane %v1379_v16, 9 }
 0x173   : > { %1942 = vmatmul.mubr.bf16.gmra.mrb[12].mxu0 %v1759_v61  ;;  %v1415_v18 = vsel %vm2490_vm11, %v1413_v15, %v1414_v48 }
 0x174   : > { %1980 = vmatpush3.bf16.msra.mxu1 %v2121_v57  ;;  %v1412_v19 = vsel %vm2490_vm11, %v1783_v17, %v1411_v10 }
 0x175   : > { %1981 = vmatprep.subr.bf16.mxu1 %v2122_v62  ;;  %v1787_v13 = vcombine.low %v1412_v19, %v1415_v18 }
 0x178   : > { %1982 = vmatpush3.bf16.msra.mxu1 %v2122_v62 }
 0x179   : > { %1983 = vmatprep.subr.bf16.mxu1 %v2123_v39 }
 0x17c   : > { %1984 = vmatpush3.bf16.msra.mxu1 %v2123_v39 }
 0x17f   : > { %1986 = vmatmul.mubr.bf16.vlgmr.msra.gmra.mrb[0].mxu1 %v1785_v12 }
 0x180   : > { %1989 = vmatprep.mubr.bf16.mxu1 %v1786_v5 }
 0x187   : > { %1990 = vmatmul.mubr.bf16.gmra.mrb[4].mxu1 %v1787_v13 }
 0x23c   : > { %v1939_v20 = vpop.f32.mrb[8].mxu0 }
 0x23d   : > { %v1208_v45 = vpop.f32.mrb[9].mxu0 }
 0x23e   : > { %v1940_v21 = vpop.f32.mrb[10].mxu0 }
 0x23f   : > { %v1211_v14 = vpop.f32.mrb[11].mxu0 }
 0x246   : > { %v1943_v46 = vpop.f32.mrb[12].mxu0 }
 0x247   : > { %v1224_v22 = vpop.f32.mrb[13].mxu0 }
 0x248   : > { %v1944_v23 = vpop.f32.mrb[14].mxu0 }
 0x249   : > { %v1227_v24 = vpop.f32.mrb[15].mxu0 }
 0x252   : > { %v1987_v25 = vpop.f32.mrb[0].mxu1 }
 0x253   : > { %v1993_v1 = vadd.f32 %v1987_v25, %v1939_v20  ;;  %v1531_v29 = vpop.f32.mrb[1].mxu1 }
 0x254   : > { %v1994_v30 = vadd.f32 %v1531_v29, %v1208_v45  ;;  %v1988_v32 = vpop.f32.mrb[2].mxu1 }
 0x255   : > { %v1579_v33 = vadd.f32 %v1993_v1, %v1796_v51  ;;  %v1995_v34 = vadd.f32 %v1988_v32, %v1940_v21  ;;  %v1534_v36 = vpop.f32.mrb[3].mxu1 }
 0x256   : > { %v1577_v37 = vadd.f32 %v1994_v30, %v1796_v51  ;;  %v1996_v40 = vadd.f32 %v1534_v36, %v1211_v14 }
 0x257   : > { %1587 = vst [vmem:[%s235_s10 + $0x10] sm:$0xff] %v1579_v33  ;;  %v1580_v41 = vadd.f32 %v1995_v34, %v1796_v51 }
 0x258   : > { %1585 = vst [vmem:[%s235_s10] sm:$0xff] %v1577_v37  ;;  %v1578_v42 = vadd.f32 %v1996_v40, %v1796_v51 }
 0x259   : > { %1588 = vst [vmem:[%s235_s10 + $0x18] sm:$0xff] %v1580_v41 }
 0x25a   : > { %1586 = vst [vmem:[%s235_s10 + $0x8] sm:$0xff] %v1578_v42  ;;  %v1991_v43 = vpop.f32.mrb[4].mxu1 }
 0x25b   : > { %v1997_v44 = vadd.f32 %v1991_v43, %v1943_v46  ;;  %v1547_v47 = vpop.f32.mrb[5].mxu1 }
 0x25c   : > { %v1998_v49 = vadd.f32 %v1547_v47, %v1224_v22  ;;  %v1992_v50 = vpop.f32.mrb[6].mxu1 }
 0x25d   : > { %v1583_v53 = vadd.f32 %v1997_v44, %v1796_v51  ;;  %v1999_v54 = vadd.f32 %v1992_v50, %v1944_v23  ;;  %v1550_v55 = vpop.f32.mrb[7].mxu1 }
 0x25e   : > { %v1581_v26 = vadd.f32 %v1998_v49, %v1796_v51  ;;  %v2000_v56 = vadd.f32 %v1550_v55, %v1227_v24 }
 0x25f   : > { %1591 = vst [vmem:[%s235_s10 + $0x30] sm:$0xff] %v1583_v53  ;;  %v1584_v57 = vadd.f32 %v1999_v54, %v1796_v51 }
 0x260   : > { %1589 = vst [vmem:[%s235_s10 + $0x20] sm:$0xff] %v1581_v26  ;;  %v1582_v28 = vadd.f32 %v2000_v56, %v1796_v51 }
 0x261   : > { %1592 = vst [vmem:[%s235_s10 + $0x38] sm:$0xff] %v1584_v57 }
 0x262   : > { %1590 = vst [vmem:[%s235_s10 + $0x28] sm:$0xff] %v1582_v28 }
 0x263   : > { %2165 = shalt.err (!%p2162_p7)
}
 0x264   : > { %s2166_s13 = scalar_lea.hbm %s2681_s14, 1024  ;;  %s2170_s6 = scalar_lea.hbm %s2731_s5, 2048 }
 0x265   : > { %p2167_p8 = scmp.ne.s32.totalorder %s2681_s14, %s2166_s13  ;;  %p2171_p1 = scmp.lt.u32.totalorder %s2681_s14, %s2731_s5 }
 0x266   : > { %p2172_p0 = scmp.lt.u32.totalorder %s2170_s6, %s2166_s13  ;;  %p2174_p6 = scmp.lt.u32.totalorder %s2166_s13, %s2681_s14 }
 0x267   : > { %p2168_p11 = pnand %p2167_p8, %p2754_p9 }
 0x268   : > { %p2173_p5 = por %p2172_p0, %p2171_p1 }
 0x269   : > { %p2169_p13 = pneg %p2168_p11 }
 0x26a   : > { %p2175_p10 = por %p2174_p6, %p2173_p5 }
 0x26c   : > { %p2176_p12 = pnand %p2175_p10, %p2169_p13 }
 0x26e   : > { %2179 = shalt.err (!%p2176_p12)
}
 0x26f   : > { %s2224_s10 = smov 128   ;;  %s2225_s11 = smov 8  }
 0x270   : > { %2030 = dma.vmem_to_hbm [thread:$0]  (%p2754_p9), %s2676_s7, 1024, %s2681_s14, %s2685_s22, %s2224_s10, %s2224_s10, %s2225_s11  }
 0x271 PF: > { %p2042_p2 = scmp.ge.s32.totalorder %s2218_s21, 2  ;;  %s1623_s30 = sand.u32 1, %s2206_s18  }
 0x272   : > { %p2755_p3 = scmp.ne.s32.totalorder %s2736_s29, 0  ;;  %s1624_s12 = scalar_lea.sflag [#allocation5], %s1623_s30 }
 0x274   : > { %p2037_p4 = pnand %p2042_p2, %p2755_p3 }
 0x276   : > { %2201 = dma.done.wait (!%p2037_p4), %s1624_s12, 1024  }
 0x277   : > { %2203 = vsyncadd (!%p2037_p4), %s1624_s12, 4294966272  ;;  %p16_p7 = scmp.ge.s32.totalorder %s2281_s24, 4   ;;  %s2756_s18 = smov %s2210_s19 }
 0x278   : > { %s2757_s19 = smov %s2214_s20  ;;  %s2758_s20 = smov %s2292_s27 }
 0x279   : > { %s2759_s21 = smov %s2281_s24  ;;  %18 = sbr.rel (!%p16_p7) target bundleno = 4 (0x4), region = 84 }
 0x280   :  { %1629 = vsyncpa [#allocation4], 1 }
 0x281   :  { %1631 = vsyncpa [#allocation4 + $0x1], 1 }
 0x282   :  { %1632 = vsyncpa [#allocation5], 1 }
 0x283   :  { %1634 = vsyncpa [#allocation5 + $0x1], 1 }

</bundles_post_ra>
